<compile_context>
chip_gen: v7x
topology: tpu7x:2x2x1
jax: 0.10.0
libtpu: 0.0.40
codegen_flags: <defaults>
</compile_context>

<pallas_src>
import jax
import jax.numpy as jnp
from jax.experimental import pallas as pl
from jax.experimental.pallas import tpu as pltpu


def _round_up(n, m):
    return ((n + m - 1) // m) * m


def _cdiv(a, b):
    return (a + b - 1) // b


def _vmem_capacity_bytes():
    # Trace-time hardware query; fall back to the most conservative part
    # (v7x: 64 MiB per TensorCore) if the query is unavailable.
    try:
        return int(pltpu.get_tpu_info().vmem_capacity_bytes)
    except Exception:
        return 64 * 1024 * 1024


def _sublane(itemsize):
    # Native sublane tile: 8 rows for 4-byte dtypes, 16 for 2-byte, 32 for 1-byte.
    return max(8, 32 // max(1, itemsize))


def _auto_tm(b_pad, c_pad, itemsize, sublane, vmem_cap):
    """Pick the batch tile height (rows per grid step)."""
    if vmem_cap <= 64 * 1024 * 1024:
        # v7x: 64 MiB VMEM/TC, 2 TensorCores per chip.
        budget, row_cap, num_cores = 24 * 1024 * 1024, 1024, 2
    else:
        # v5e / v6e: 128 MiB VMEM, single TensorCore.
        budget, row_cap, num_cores = 56 * 1024 * 1024, 2048, 1
    # Double-buffered x + out blocks ~= 4 live copies of tm * C * itemsize.
    max_rows = budget // max(1, 4 * c_pad * itemsize)
    max_rows = max(sublane, min(row_cap, (max_rows // sublane) * sublane))
    max_rows = min(max_rows, b_pad)
    if num_cores > 1 and b_pad >= num_cores * sublane:
        # Even number of near-equal grid steps so the "parallel" batch axis
        # keeps both v7x TensorCores busy (no-op path on single-TC parts).
        k = 1
        while _round_up(_cdiv(b_pad, num_cores * k), sublane) > max_rows:
            k += 1
        return _round_up(_cdiv(b_pad, num_cores * k), sublane)
    return max_rows


def _enhance_kernel(scale_ref, x_ref, v_ref, o_ref):
    # scale_ref: (1,)       f32 scalar in SMEM  (torch.rand(1)*0.25 stand-in)
    # x_ref:     (tm, C)    tile of the input (batch rows, padded feature dim)
    # v_ref:     (1, C)     raw noise vector, VMEM-resident for the whole grid
    # o_ref:     (tm, C)    output tile
    o_ref[...] = (x_ref[...] + scale_ref[0] * v_ref[...]).astype(o_ref.dtype)


def enhance(x, noise_vector, scale, *, tm=None, min_pallas_bytes=2 * 1024 * 1024):
    """out = x + scale * noise_vector  (vector broadcast over batch rows).

    x: (B, C); noise_vector: (C,); scale: (1,) f32.
    """
    B, C = x.shape
    itemsize = jnp.dtype(x.dtype).itemsize
    noise_vector = noise_vector.astype(x.dtype)
    scale = scale.astype(jnp.float32).reshape((1,))

    # Tiny inputs: a fused XLA broadcast-add is already at roofline; skip the
    # pallas_call launch / pipeline prologue cost entirely.
    if B * C * itemsize < min_pallas_bytes:
        return (x.astype(jnp.float32)
                + scale[0] * noise_vector.astype(jnp.float32)).astype(x.dtype)

    vmem_cap = _vmem_capacity_bytes()
    sublane = _sublane(itemsize)

    # Keep the output lane-dense: pad the feature dim to a multiple of 128 so
    # stores are full (unmasked) vst's; slice the padding off at the end.
    C_pad = _round_up(C, 128)
    if C_pad != C:
        x_p = jnp.pad(x, ((0, 0), (0, C_pad - C)))
        v_p = jnp.pad(noise_vector, (0, C_pad - C))
    else:
        x_p, v_p = x, noise_vector

    B_pad = _round_up(B, sublane)
    if tm is None:
        tm = _auto_tm(B_pad, C_pad, itemsize, sublane, vmem_cap)
    tm = max(sublane, min(_round_up(tm, sublane), B_pad))

    # Ragged last batch block is fine: Pallas clips the padded rows on writeback.
    grid = (_cdiv(B, tm),)

    block_bytes = tm * C_pad * itemsize
    # ~85% of chip VMEM is the hard ceiling (leaves headroom for Pallas'
    # bookkeeping / double-buffer scratch); within that, request the live
    # blocks plus slack, never below 32 MiB (v5e's default scoped limit is
    # only 16 MiB, which would otherwise bind first).
    vmem_ceiling = int(vmem_cap * 0.85)
    vmem_limit = max(32 * 1024 * 1024, int(4 * block_bytes * 1.5) + (1 << 20))
    vmem_limit = min(vmem_ceiling, vmem_limit)

    v2d = v_p.reshape(1, C_pad)

    out = pl.pallas_call(
        _enhance_kernel,
        out_shape=jax.ShapeDtypeStruct((B, C_pad), x.dtype),
        grid=grid,
        in_specs=[
            # Scalar scale: untiled, lives in SMEM (one word).
            pl.BlockSpec(memory_space=pltpu.MemorySpace.SMEM),
            # x: lane-dense (tm, C_pad) blocks, 1-D grid over batch only.
            pl.BlockSpec((tm, C_pad), lambda i: (i, 0)),
            # Noise vector: constant block index -> single DMA, stays resident.
            pl.BlockSpec((1, C_pad), lambda i: (0, 0)),
        ],
        out_specs=pl.BlockSpec((tm, C_pad), lambda i: (i, 0)),
        compiler_params=pltpu.CompilerParams(
            # "parallel" shards the batch axis across v7x's 2 TensorCores
            # (tm sizing above keeps the split even); no-op on v5e/v6e.
            dimension_semantics=("parallel",),
            vmem_limit_bytes=vmem_limit,
        ),
        # NOTE: if the caller can donate x, input_output_aliases={1: 0} would
        # avoid a defensive copy; left off since donation is caller-dependent.
    )(scale, x_p, v2d)

    if C_pad != C:
        out = out[:, :C]
    return out


def feature_enhancer(x, key, **kwargs):
    """FeatureEnhancer.forward: x + (rand()*0.25) * randn(C), fresh per call."""
    # TODO(synk): jax.random stands in for torch.rand/torch.randn; draws are
    # fresh per call (matching torch semantics) but not bit-identical to torch.
    C = x.shape[1]
    k_scale, k_noise = jax.random.split(key)
    scale = jax.random.uniform(k_scale, (1,), dtype=jnp.float32) * 0.25
    noise = jax.random.normal(k_noise, (C,), dtype=jnp.float32)
    return enhance(x, noise, scale, **kwargs)


if __name__ == "__main__":
    key = jax.random.PRNGKey(0)
    kx, kr, kn, kx2, kn2 = jax.random.split(key, 5)

    B, C = 16, 256  # small shape; C = x.size(1) = feature dim
    x = jax.random.normal(kx, (B, C), dtype=jnp.float32)

    # Deterministic stand-ins for torch.rand(1)*0.25 and torch.randn(C) so the
    # reference check is exact.
    scale = jax.random.uniform(kr, (1,), dtype=jnp.float32) * 0.25
    noise = jax.random.normal(kn, (C,), dtype=jnp.float32)

    # min_pallas_bytes=0 forces the Pallas path even at this tiny test shape.
    out = jax.block_until_ready(enhance(x, noise, scale, min_pallas_bytes=0))
    ref = x + scale[0] * noise
    assert out.shape == (B, C) and out.dtype == jnp.float32
    assert jnp.allclose(out, ref, atol=1e-6, rtol=1e-6)

    # Lane-padding path: feature dim not a multiple of 128.
    C2 = 200
    x2 = jax.random.normal(kx2, (B, C2), dtype=jnp.float32)
    noise2 = jax.random.normal(kn2, (C2,), dtype=jnp.float32)
    out2 = jax.block_until_ready(enhance(x2, noise2, scale, min_pallas_bytes=0))
    ref2 = x2 + scale[0] * noise2
    assert out2.shape == (B, C2)
    assert jnp.allclose(out2, ref2, atol=1e-6, rtol=1e-6)

    # High-level forward with fresh per-call randomness (shape/dtype check;
    # the tiny shape takes the fused-XLA fast path by design).
    out3 = jax.block_until_ready(feature_enhancer(x, key))
    assert out3.shape == x.shape and out3.dtype == x.dtype

    print("KERNEL_OK")
</pallas_src>

<mosaic_0001>
module attributes {stable_mosaic.version = 11 : i64} {
  func.func @_enhance_kernel(%arg0: i32, %arg1: memref<1xf32, #tpu.memory_space<smem>>, %arg2: memref<8x256xf32, #tpu.memory_space<vmem>>, %arg3: memref<1x256xf32, #tpu.memory_space<vmem>>, %arg4: memref<8x256xf32, #tpu.memory_space<vmem>>) attributes {dimension_semantics = [#tpu.dimension_semantics<parallel>], iteration_bounds = array<i64: 2>, scalar_prefetch = 0 : i64, scratch_operands = 0 : i64, tpu.core_type = #tpu.core_type<tc>, window_params = [{transform_indices = @transform_0, window_bounds = array<i64: 1>}, {transform_indices = @transform_1, window_bounds = array<i64: 8, 256>}, {pipeline_mode = #tpu.pipeline_mode<synchronous>, transform_indices = @transform_2, window_bounds = array<i64: 1, 256>}, {transform_indices = @transform_3, window_bounds = array<i64: 8, 256>}]} {
    %c0 = arith.constant 0 : index
    %c0_0 = arith.constant 0 : index
    %0 = vector.load %arg2[%c0, %c0_0] : memref<8x256xf32, #tpu.memory_space<vmem>>, vector<8x256xf32>
    %c0_1 = arith.constant 0 : index
    %1 = memref.load %arg1[%c0_1] : memref<1xf32, #tpu.memory_space<smem>>
    %c0_2 = arith.constant 0 : index
    %c0_3 = arith.constant 0 : index
    %2 = vector.load %arg3[%c0_2, %c0_3] : memref<1x256xf32, #tpu.memory_space<vmem>>, vector<1x256xf32>
    %3 = vector.broadcast %1 : f32 to vector<1x256xf32>
    %4 = arith.mulf %3, %2 : vector<1x256xf32>
    %5 = vector.broadcast %4 : vector<1x256xf32> to vector<8x256xf32>
    %6 = arith.addf %0, %5 : vector<8x256xf32>
    %c0_4 = arith.constant 0 : index
    %c0_5 = arith.constant 0 : index
    %7 = vector.load %arg4[%c0_4, %c0_5] : memref<8x256xf32, #tpu.memory_space<vmem>>, vector<8x256xf32>
    tpu.vector_store %arg4[%c0_4, %c0_5], %6 {strides = array<i32>} : memref<8x256xf32, #tpu.memory_space<vmem>>, vector<8x256xf32>,
    return
  }
  func.func @transform_0(%arg0: i32) -> i32 {
    %c0_i32 = arith.constant 0 : i32
    %c0_i32_0 = arith.constant 0 : i32
    return %c0_i32 : i32
  }
  func.func @transform_1(%arg0: i32) -> (i32, i32) {
    %c0_i32 = arith.constant 0 : i32
    %c0_i32_0 = arith.constant 0 : i32
    return %arg0, %c0_i32 : i32, i32
  }
  func.func @transform_2(%arg0: i32) -> (i32, i32) {
    %c0_i32 = arith.constant 0 : i32
    %c0_i32_0 = arith.constant 0 : i32
    %c0_i32_1 = arith.constant 0 : i32
    return %c0_i32, %c0_i32_0 : i32, i32
  }
  func.func @transform_3(%arg0: i32) -> (i32, i32) {
    %c0_i32 = arith.constant 0 : i32
    %c0_i32_0 = arith.constant 0 : i32
    return %arg0, %c0_i32 : i32, i32
  }
}

</mosaic_0001>

<bundles_post_ra>
// kernel: tpu_custom_call.1
= control target key start
LH: loop header
LB: loop body
LE: loop exit
PB: predicated region body
PF: predicated region fallthrough
CT: control target
= control target key end

     0   :  { %s643_s0 = inlined_call_operand.<no memory space> [shape: f32[1], index: 0, kind: input, shape index: {}]   ;;  %s644_s1 = inlined_call_operand.hbm [shape: f32[16,256], index: 1, kind: input, shape index: {}]   ;;  %s645_s2 = inlined_call_operand.vmem [shape: f32[1,256], index: 2, kind: input, shape index: {}]   ;;  %s646_s3 = inlined_call_operand.hbm [shape: f32[16,256], index: 3, kind: output, shape index: {}]  }
   0x1   :  { %8 = sst [smem:[#allocation2]] %s643_s0 }
   0x2   :  { %9 = vsyncpa [#allocation4], 0 }
   0x3   :  { %11 = vsyncpa [#allocation4 + $0x1], 0 }
   0x4   :  { %12 = vsyncpa [#allocation5], 0 }
   0x5   :  { %14 = vsyncpa [#allocation5 + $0x1], 0  ;;  %s479_s14 = smov 0   ;;  %s481_s15 = smov 0  }
   0x6   :  { %s483_s16 = smov 0   ;;  %s485_s17 = smov 0  }
   0x7 LB: > { %s500_s0 = sadd.s32 4294967295, %s452_s17   ;;  %s294_s18 = sadd.s32 4294967294, %s452_s17   ;;  %s452_s17 = sphi %s485_s17, %s661_s17   ;;  %s448_s16 = sphi %s483_s16, %s660_s16   ;;  %s444_s15 = sphi %s481_s15, %s659_s15   ;;  %s440_s14 = sphi %s479_s14, %s658_s14  }
   0x8   : > { %s504_s19 = sadd.s32 1, %s452_s17   ;;  %s48_s20 = sadd.s32 1, %s448_s16 }
   0x9   : > { %s45_s21 = ssub.s32 %s452_s17, %s504_s19  ;;  %p55_p0 = scmp.ne.s32.totalorder %s448_s16, %s444_s15 }
   0xa   : > { %p46_p1 = scmp.eq.s32.totalorder %s45_s21, 0  ;;  %p56_p2 = scmp.eq.s32.totalorder %s452_s17, 0 }
   0xb   : > { %p61_p3 = scmp.ne.s32.totalorder %s444_s15, %s440_s14  ;;  %p62_p4 = scmp.eq.s32.totalorder %s500_s0, 0 }
   0xc   : > { %s516_s22 = scalar_select %p46_p1, %s448_s16, %s48_s20  }
   0xd   : > { %p518_p5 = por %p56_p2, %p55_p0  ;;  %p522_p6 = por %p62_p4, %p61_p3 }
   0xe   : > { %p106_p7 = scmp.eq.s32.totalorder %s500_s0, 1  ;;  %p112_p8 = scmp.eq.s32.totalorder %s294_s18, 1 }
   0xf   : > { %p322_p10 = scmp.lt.s32.totalorder %s452_s17, 2  ;;  %s138_s27 = sand.u32 1, %s448_s16  }
  0x10   : > { %p529_p11 = por %p106_p7, %p55_p0  ;;  %p533_p12 = por %p112_p8, %p61_p3 }
  0x11   : > { %s308_s28 = sshll.u32 %s452_s17, 8  ;;  %s297_s29 = sshll.u32 %s138_s27, 4 }
  0x12   : > { %s650_s25 = scalar_select %p529_p11, 1, 0 }
  0x13   : > { %s651_s26 = scalar_select %p533_p12, 1, 0 }
  0x14   : > { %s542_s5 = scalar_lea.hbm %s644_s1, %s308_s28  ;;  %s142_s6 = scalar_lea.vmem [#allocation3], %s297_s29 }
  0x15   : > { %s150_s7 = sshll.u32 %s142_s6, 4  ;;  %p546_p13 = pnand %p322_p10, %p518_p5  ;;  %s550_s7 = int_to_ptr.vmem [resolvable:$true] %s150_s7 }
  0x16   : > { %s139_s9 = scalar_lea.sflag [#allocation4], %s138_s27  ;;  %s356_s10 = scalar_lea.hbm %s542_s5, 256 }
  0x17   : > { %p357_p2 = scmp.ne.s32.totalorder %s542_s5, %s356_s10  ;;  %p358_p3 = pneg %p546_p13 }
  0x18   : > { %s361_s13 = scalar_lea.hbm %s644_s1, 512  ;;  %p362_p5 = scmp.lt.u32.totalorder %s542_s5, %s644_s1 }
  0x19   : > { %p359_p4 = pnand %p358_p3, %p357_p2  ;;  %p363_p8 = scmp.lt.u32.totalorder %s361_s13, %s356_s10 }
  0x1a   : > { %p365_p9 = scmp.lt.u32.totalorder %s356_s10, %s542_s5 }
  0x1b   : > { %p360_p7 = pneg %p359_p4  ;;  %p364_p10 = por %p363_p8, %p362_p5 }
  0x1d   : > { %p366_p0 = por %p365_p9, %p364_p10 }
  0x1f   : > { %p367_p1 = pnand %p366_p0, %p360_p7 }
  0x21   : > { %370 = shalt.err (!%p367_p1)
}
  0x22   : > { %s371_s21 = scalar_lea.vmem %s550_s7, 256  ;;  %s454_s23 = smov [#allocation3]  }
  0x23   : > { %p372_p2 = scmp.ne.s32.totalorder %s550_s7, %s371_s21  ;;  %s376_s27 = sshll.u32 %s454_s23, 4  ;;  %s377_s27 = int_to_ptr.vmem [resolvable:$false] %s376_s27 }
  0x24   : > { %s378_s28 = scalar_lea.vmem %s377_s27, 512  ;;  %p379_p11 = scmp.lt.s32.totalorder %s550_s7, %s377_s27 }
  0x25   : > { %p374_p4 = pnand %p372_p2, %p358_p3  ;;  %p380_p5 = scmp.lt.s32.totalorder %s378_s28, %s371_s21 }
  0x27   : > { %p375_p12 = pneg %p374_p4  ;;  %p381_p8 = por %p380_p5, %p379_p11 }
  0x29   : > { %p382_p9 = pnand %p381_p8, %p375_p12 }
  0x2b   : > { %385 = shalt.err (!%p382_p9)
}
  0x2c   : > { %317 = dma.hbm_to_vmem [thread:$0]  (!%p546_p13), %s542_s5, 256, %s550_s7, %s139_s9  }
  0x2d   : > { %p653_p0 = scmp.lt.s32.totalorder %s452_s17, 3  ;;  %p654_p1 = scmp.ge.s32.totalorder %s452_s17, 1 }
  0x2f   : > { %p156_p3 = pnand %p654_p1, %p653_p0 }
  0x30   : > { %s584_s29 = sand.u32 (!%p156_p3), 1, %s444_s15  }
  0x31   : > { %159 = sbr.rel (%p156_p3) target bundleno = 84 (0x54), region = 32  ;;  %s301_s30 = sshll.u32 (!%p156_p3), %s584_s29, 4 }
  0x32   : > { %s162_s4 = scalar_lea.sflag (!%p156_p3), [#allocation4], %s584_s29  ;;  %s165_s6 = scalar_lea.vmem (!%p156_p3), [#allocation3], %s301_s30 }
  0x38   : > { %431 = dma.done.wait (%p522_p6), %s162_s4, 256  }
  0x39   : > { %433 = vsyncadd (%p522_p6), %s162_s4, 4294967040  ;;  %v195_v0 = vlaneseq  ;;  %s190_s5 = sld [smem:[#allocation2]]  ;;  %v191_v4 = vld [vmem:[%s645_s2] sm:$0x3]  ;;  %s187_s9 = scalar_lea.vmem [#allocation6], %s301_s30  ;;  %v189_v8 = vld [vmem:[%s165_s6 + $0x8] sm:$0xff] }
  0x3a   : > { %v188_v7 = vld [vmem:[%s165_s6] sm:$0xff]  ;;  %s224_s10 = sshll.u32 %s187_s9, 4  ;;  %s309_s24 = sshll.u32 %s500_s0, 8  ;;  %s596_s10 = int_to_ptr.vmem [resolvable:$true] %s224_s10 }
  0x3b   : > { %v196_v1 = vshrl.u32 %v195_v0, 7  ;;  %s601_s13 = scalar_lea.hbm %s646_s3, %s309_s24  ;;  %s210_s18 = scalar_lea.sflag [#allocation5], %s584_s29 }
  0x3c   : > { %s386_s20 = scalar_lea.vmem %s596_s10, 256  ;;  %p655_p11 = scmp.ne.s32.totalorder %s650_s25, 0 }
  0x3d   : > { %v197_v2 = vsub.s32 0, %v196_v1  ;;  %v201_v3 = vsub.s32 1, %v196_v1  ;;  %p387_p6 = scmp.ne.s32.totalorder %s596_s10, %s386_s20  ;;  %s455_s0 = smov [#allocation6]  }
  0x3e   : > { %s390_s21 = sshll.u32 %s455_s0, 4  ;;  %s391_s21 = int_to_ptr.vmem [resolvable:$false] %s390_s21 }
  0x3f   : > { %v192_v5 = vstv %s190_s5  ;;  %p388_p12 = pnand %p387_p6, %p655_p11  ;;  %s392_s23 = scalar_lea.vmem %s391_s21, 512 }
  0x40   : > { %v193_v6 = vmul.f32 %v192_v5, %v191_v4  ;;  %p393_p7 = scmp.lt.s32.totalorder %s596_s10, %s391_s21  ;;  %p394_p10 = scmp.lt.s32.totalorder %s392_s23, %s386_s20 }
  0x41   : > { %p389_p13 = pneg %p388_p12 }
  0x42   : > { %v198_v9 = vrot.slane %v193_v6, %v197_v2  ;;  %v202_v10 = vrot.slane %v193_v6, %v201_v3  ;;  %p395_p2 = por %p394_p10, %p393_p7 }
  0x44   : > { %v205_v11 = vadd.f32 %v198_v9, %v188_v7  ;;  %v206_v12 = vadd.f32 %v202_v10, %v189_v8  ;;  %p396_p4 = pnand %p395_p2, %p389_p13 }
  0x46   : > { %207 = vst [vmem:[%s187_s9] sm:$0xff] %v205_v11  ;;  %208 = vst [vmem:[%s187_s9 + $0x8] sm:$0xff] %v206_v12 }
  0x47   : > { %399 = shalt.err (!%p396_p4)
}
  0x48   : > { %s400_s27 = scalar_lea.hbm %s601_s13, 256  ;;  %s404_s30 = scalar_lea.hbm %s646_s3, 512 }
  0x49   : > { %p401_p5 = scmp.ne.s32.totalorder %s601_s13, %s400_s27  ;;  %p405_p0 = scmp.lt.u32.totalorder %s601_s13, %s646_s3 }
  0x4a   : > { %p406_p1 = scmp.lt.u32.totalorder %s404_s30, %s400_s27  ;;  %p408_p6 = scmp.lt.u32.totalorder %s400_s27, %s601_s13 }
  0x4b   : > { %p402_p8 = pnand %p401_p5, %p655_p11 }
  0x4c   : > { %p407_p3 = por %p406_p1, %p405_p0 }
  0x4d   : > { %p403_p9 = pneg %p402_p8 }
  0x4e   : > { %p409_p12 = por %p408_p6, %p407_p3 }
  0x50   : > { %p410_p13 = pnand %p409_p12, %p403_p9 }
  0x52   : > { %413 = shalt.err (!%p410_p13)
}
  0x53   : > { %312 = dma.vmem_to_hbm [thread:$0]  (%p655_p11), %s596_s10, 256, %s601_s13, %s210_s18  }
  0x54 PF: > { %s236_s5 = sand.u32 1, %s440_s14   ;;  %p656_p7 = scmp.ne.s32.totalorder %s651_s26, 0 }
  0x55   : > { %p657_p10 = scmp.ge.s32.totalorder %s452_s17, 2  ;;  %s237_s7 = scalar_lea.sflag [#allocation5], %s236_s5 }
  0x57   : > { %p319_p2 = pnand %p657_p10, %p656_p7 }
  0x59   : > { %435 = dma.done.wait (!%p319_p2), %s237_s7, 256  }
  0x5a   : > { %437 = vsyncadd (!%p319_p2), %s237_s7, 4294967040  ;;  %p17_p4 = scmp.ge.s32.totalorder %s504_s19, 4   ;;  %s658_s14 = smov %s444_s15 }
  0x5b   : > { %s659_s15 = smov %s448_s16  ;;  %s660_s16 = smov %s516_s22 }
  0x5c   : > { %s661_s17 = smov %s504_s19  ;;  %19 = sbr.rel (!%p17_p4) target bundleno = 7 (0x7), region = 77 }
  0x63   :  { %242 = vsyncpa [#allocation4], 1 }
  0x64   :  { %244 = vsyncpa [#allocation4 + $0x1], 1 }
  0x65   :  { %245 = vsyncpa [#allocation5], 1 }
  0x66   :  { %247 = vsyncpa [#allocation5 + $0x1], 1 }

</bundles_post_ra>
